<compile_context>
chip_gen: v6e
topology: v6e:2x2x1
jax: 0.10.0
libtpu: 0.0.40
codegen_flags: <defaults>
</compile_context>

<pallas_src>
import functools

import jax
import jax.numpy as jnp
from jax.experimental import pallas as pl
from jax.experimental.pallas import tpu as pltpu


def _round_up(v, m):
    return ((v + m - 1) // m) * m


def _mlp_kernel(x_ref, w1_ref, b1_ref, w2_ref, b2_ref, w3_ref, b3_ref, o_ref):
    # Whole hot path (3 matmuls + bias + ReLU) fused; every operand lives in VMEM.
    # Matmul inputs may be bf16; accumulation is always f32 on the MXU.
    x = x_ref[...]
    h1 = jnp.dot(x, w1_ref[...], preferred_element_type=jnp.float32) + b1_ref[...]
    h1 = jnp.maximum(h1, 0.0).astype(w2_ref.dtype)
    h2 = jnp.dot(h1, w2_ref[...], preferred_element_type=jnp.float32) + b2_ref[...]
    h2 = jnp.maximum(h2, 0.0).astype(w3_ref.dtype)
    h3 = jnp.dot(h2, w3_ref[...], preferred_element_type=jnp.float32) + b3_ref[...]
    o_ref[...] = h3.astype(o_ref.dtype)


def _choose_block_b(batch):
    """>=128 rows to fill MXU / amortize ~600-cycle step overhead, capped at 512 rows,
    and prefer >=2 grid steps so v7x megacore can shard the batch axis."""
    b_pad = _round_up(batch, 128)
    blk = min(512, b_pad)
    if blk == b_pad and b_pad >= 256:
        blk = _round_up(b_pad // 2, 128)
    return blk


@functools.partial(jax.jit, static_argnames=("block_b", "use_bf16"))
def policy_network_forward(x, params, block_b=None, use_bf16=True):
    """x: (B, input_dim) float32. params: dict of w1,b1,w2,b2,w3,b3 with
    w_i stored as (in_features, out_features) so y = x @ W + b == PyTorch x @ W.T + b."""
    w1, b1, w2, b2, w3, b3 = (params[k] for k in ("w1", "b1", "w2", "b2", "w3", "b3"))
    B, in_dim = x.shape
    h1_dim, h2_dim = w1.shape[1], w2.shape[1]
    out_dim = w3.shape[1]

    if block_b is None:
        block_b = _choose_block_b(B)
    b_pad = _round_up(max(B, block_b), block_b)       # pad batch instead of asserting
    out_pad = _round_up(out_dim, 128)                 # lane-dense output slab (unmasked stores)

    mm_dtype = jnp.bfloat16 if use_bf16 else jnp.float32
    x_p = x
    if b_pad != B:
        x_p = jnp.pad(x_p, ((0, b_pad - B), (0, 0)))
    x_p = x_p.astype(mm_dtype)
    w1c, w2c, w3c = w1.astype(mm_dtype), w2.astype(mm_dtype), w3.astype(mm_dtype)
    b3c = b3
    if out_pad != out_dim:
        w3c = jnp.pad(w3c, ((0, 0), (0, out_pad - out_dim)))
        b3c = jnp.pad(b3c, ((0, 0), (0, out_pad - out_dim)))

    grid = (b_pad // block_b,)
    in_specs = [
        pl.BlockSpec((block_b, in_dim), lambda i: (i, 0)),   # x: tiled over batch
        pl.BlockSpec((in_dim, h1_dim), lambda i: (0, 0)),    # weights/biases: grid-invariant
        pl.BlockSpec((1, h1_dim), lambda i: (0, 0)),
        pl.BlockSpec((h1_dim, h2_dim), lambda i: (0, 0)),
        pl.BlockSpec((1, h2_dim), lambda i: (0, 0)),
        pl.BlockSpec((h2_dim, out_pad), lambda i: (0, 0)),
        pl.BlockSpec((1, out_pad), lambda i: (0, 0)),
    ]
    out_spec = pl.BlockSpec((block_b, out_pad), lambda i: (i, 0))

    flops = 2 * b_pad * (in_dim * h1_dim + h1_dim * h2_dim + h2_dim * out_pad)
    bytes_accessed = (
        x_p.size * x_p.dtype.itemsize
        + sum(a.size * a.dtype.itemsize for a in (w1c, b1, w2c, b2, w3c, b3c))
        + b_pad * out_pad * 4
    )
    cost = pl.CostEstimate(flops=flops, transcendentals=0, bytes_accessed=bytes_accessed)

    out_padded = pl.pallas_call(
        _mlp_kernel,
        out_shape=jax.ShapeDtypeStruct((b_pad, out_pad), jnp.float32),
        grid_spec=pltpu.PrefetchScalarGridSpec(
            num_scalar_prefetch=0,
            grid=grid,
            in_specs=in_specs,
            out_specs=out_spec,
        ),
        compiler_params=pltpu.CompilerParams(
            dimension_semantics=("parallel",),       # megacore-shardable batch axis
            vmem_limit_bytes=32 * 1024 * 1024,       # safe on v5e/v6e/v7x; generous for ~MB tiles
        ),
        cost_estimate=cost,
    )(x_p, w1c, b1, w2c, b2, w3c, b3c)

    return out_padded[:B, :out_dim]


def init_params(key, input_dim, output_dim):
    """Deterministic init mimicking nn.Linear default (U(-1/sqrt(fan_in), 1/sqrt(fan_in)))."""
    dims = [(input_dim, 256), (256, 128), (128, output_dim)]
    params = {}
    for idx, (fan_in, fan_out) in enumerate(dims, start=1):
        key, kw, kb = jax.random.split(key, 3)
        bound = 1.0 / jnp.sqrt(float(fan_in))
        params[f"w{idx}"] = jax.random.uniform(
            kw, (fan_in, fan_out), jnp.float32, -bound, bound
        )
        params[f"b{idx}"] = jax.random.uniform(
            kb, (1, fan_out), jnp.float32, -bound, bound
        )
    return params


def _reference_forward(x, params):
    h = jnp.maximum(x @ params["w1"] + params["b1"], 0.0)
    h = jnp.maximum(h @ params["w2"] + params["b2"], 0.0)
    return h @ params["w3"] + params["b3"]


if __name__ == "__main__":
    input_dim, output_dim, batch = 32, 8, 8
    key = jax.random.PRNGKey(0)
    key, kx = jax.random.split(key)
    x = jax.random.normal(kx, (batch, input_dim), dtype=jnp.float32)
    params = init_params(key, input_dim, output_dim)
    ref = _reference_forward(x, params)

    # f32 path (tight tolerance)
    out_f32 = policy_network_forward(x, params, use_bf16=False)
    jax.block_until_ready(out_f32)
    assert out_f32.shape == (batch, output_dim)
    assert jnp.allclose(out_f32, ref, atol=1e-3, rtol=1e-3), "f32 path mismatch vs reference"

    # bf16 matmul path (default; loose tolerance per bf16 rounding)
    out_bf16 = policy_network_forward(x, params)
    jax.block_until_ready(out_bf16)
    assert out_bf16.shape == (batch, output_dim)
    assert jnp.allclose(out_bf16, ref, atol=5e-2, rtol=5e-2), "bf16 path mismatch vs reference"

    # multi-step grid + batch padding path (grid length 2, non-multiple batch)
    key, kx2 = jax.random.split(key)
    x2 = jax.random.normal(kx2, (260, input_dim), dtype=jnp.float32)
    out2 = policy_network_forward(x2, params)
    jax.block_until_ready(out2)
    assert out2.shape == (260, output_dim)
    assert jnp.allclose(out2, _reference_forward(x2, params), atol=5e-2, rtol=5e-2)

    print("KERNEL_OK")
</pallas_src>

<mosaic_0001>
module attributes {stable_mosaic.version = 11 : i64} {
  func.func @_mlp_kernel(%arg0: i32, %arg1: memref<128x32xf32, #tpu.memory_space<vmem>>, %arg2: memref<32x256xf32, #tpu.memory_space<vmem>>, %arg3: memref<1x256xf32, #tpu.memory_space<vmem>>, %arg4: memref<256x128xf32, #tpu.memory_space<vmem>>, %arg5: memref<1x128xf32, #tpu.memory_space<vmem>>, %arg6: memref<128x128xf32, #tpu.memory_space<vmem>>, %arg7: memref<1x128xf32, #tpu.memory_space<vmem>>, %arg8: memref<128x128xf32, #tpu.memory_space<vmem>>) attributes {dimension_semantics = [#tpu.dimension_semantics<parallel>], iteration_bounds = array<i64: 1>, scalar_prefetch = 0 : i64, scratch_operands = 0 : i64, tpu.core_type = #tpu.core_type<tc>, window_params = [{transform_indices = @transform_0, window_bounds = array<i64: 128, 32>}, {pipeline_mode = #tpu.pipeline_mode<synchronous>, transform_indices = @transform_1, window_bounds = array<i64: 32, 256>}, {pipeline_mode = #tpu.pipeline_mode<synchronous>, transform_indices = @transform_2, window_bounds = array<i64: 1, 256>}, {pipeline_mode = #tpu.pipeline_mode<synchronous>, transform_indices = @transform_3, window_bounds = array<i64: 256, 128>}, {pipeline_mode = #tpu.pipeline_mode<synchronous>, transform_indices = @transform_4, window_bounds = array<i64: 1, 128>}, {pipeline_mode = #tpu.pipeline_mode<synchronous>, transform_indices = @transform_5, window_bounds = array<i64: 128, 128>}, {pipeline_mode = #tpu.pipeline_mode<synchronous>, transform_indices = @transform_6, window_bounds = array<i64: 1, 128>}, {transform_indices = @transform_7, window_bounds = array<i64: 128, 128>}]} {
    %c0 = arith.constant 0 : index
    %c0_0 = arith.constant 0 : index
    %0 = vector.load %arg1[%c0, %c0_0] : memref<128x32xf32, #tpu.memory_space<vmem>>, vector<128x32xf32>
    %c0_1 = arith.constant 0 : index
    %c0_2 = arith.constant 0 : index
    %1 = vector.load %arg2[%c0_1, %c0_2] : memref<32x256xf32, #tpu.memory_space<vmem>>, vector<32x256xf32>
    %cst = arith.constant dense<0.000000e+00> : vector<128x256xf32>
    %2 = tpu.matmul %0, %1, %cst {dimension_numbers = #tpu.dot_dimension_numbers<[1], [0], [0], [1], [0, 0, 1, 1], [], []>} : vector<128x32xf32>, vector<32x256xf32>, vector<128x256xf32> -> vector<128x256xf32>
    %c0_3 = arith.constant 0 : index
    %c0_4 = arith.constant 0 : index
    %3 = vector.load %arg3[%c0_3, %c0_4] : memref<1x256xf32, #tpu.memory_space<vmem>>, vector<1x256xf32>
    %4 = vector.broadcast %3 : vector<1x256xf32> to vector<128x256xf32>
    %5 = arith.addf %2, %4 : vector<128x256xf32>
    %cst_5 = arith.constant 0.000000e+00 : f32
    %6 = vector.broadcast %cst_5 : f32 to vector<128x256xf32>
    %7 = arith.maximumf %5, %6 : vector<128x256xf32>
    %c0_6 = arith.constant 0 : index
    %c0_7 = arith.constant 0 : index
    %8 = vector.load %arg4[%c0_6, %c0_7] : memref<256x128xf32, #tpu.memory_space<vmem>>, vector<256x128xf32>
    %cst_8 = arith.constant dense<0.000000e+00> : vector<128x128xf32>
    %9 = tpu.matmul %7, %8, %cst_8 {dimension_numbers = #tpu.dot_dimension_numbers<[1], [0], [0], [1], [0, 0, 1, 1], [], []>} : vector<128x256xf32>, vector<256x128xf32>, vector<128x128xf32> -> vector<128x128xf32>
    %c0_9 = arith.constant 0 : index
    %c0_10 = arith.constant 0 : index
    %10 = vector.load %arg5[%c0_9, %c0_10] : memref<1x128xf32, #tpu.memory_space<vmem>>, vector<1x128xf32>
    %11 = vector.broadcast %10 : vector<1x128xf32> to vector<128x128xf32>
    %12 = arith.addf %9, %11 : vector<128x128xf32>
    %cst_11 = arith.constant 0.000000e+00 : f32
    %13 = vector.broadcast %cst_11 : f32 to vector<128x128xf32>
    %14 = arith.maximumf %12, %13 : vector<128x128xf32>
    %c0_12 = arith.constant 0 : index
    %c0_13 = arith.constant 0 : index
    %15 = vector.load %arg6[%c0_12, %c0_13] : memref<128x128xf32, #tpu.memory_space<vmem>>, vector<128x128xf32>
    %cst_14 = arith.constant dense<0.000000e+00> : vector<128x128xf32>
    %16 = tpu.matmul %14, %15, %cst_14 {dimension_numbers = #tpu.dot_dimension_numbers<[1], [0], [0], [1], [0, 0, 1, 1], [], []>} : vector<128x128xf32>, vector<128x128xf32>, vector<128x128xf32> -> vector<128x128xf32>
    %c0_15 = arith.constant 0 : index
    %c0_16 = arith.constant 0 : index
    %17 = vector.load %arg7[%c0_15, %c0_16] : memref<1x128xf32, #tpu.memory_space<vmem>>, vector<1x128xf32>
    %18 = vector.broadcast %17 : vector<1x128xf32> to vector<128x128xf32>
    %19 = arith.addf %16, %18 : vector<128x128xf32>
    %c0_17 = arith.constant 0 : index
    %c0_18 = arith.constant 0 : index
    %20 = vector.load %arg8[%c0_17, %c0_18] : memref<128x128xf32, #tpu.memory_space<vmem>>, vector<128x128xf32>
    tpu.vector_store %arg8[%c0_17, %c0_18], %19 {strides = array<i32>} : memref<128x128xf32, #tpu.memory_space<vmem>>, vector<128x128xf32>,
    return
  }
  func.func @transform_0(%arg0: i32) -> (i32, i32) {
    %c0_i32 = arith.constant 0 : i32
    %c0_i32_0 = arith.constant 0 : i32
    return %arg0, %c0_i32 : i32, i32
  }
  func.func @transform_1(%arg0: i32) -> (i32, i32) {
    %c0_i32 = arith.constant 0 : i32
    %c0_i32_0 = arith.constant 0 : i32
    %c0_i32_1 = arith.constant 0 : i32
    return %c0_i32, %c0_i32_0 : i32, i32
  }
  func.func @transform_2(%arg0: i32) -> (i32, i32) {
    %c0_i32 = arith.constant 0 : i32
    %c0_i32_0 = arith.constant 0 : i32
    %c0_i32_1 = arith.constant 0 : i32
    return %c0_i32, %c0_i32_0 : i32, i32
  }
  func.func @transform_3(%arg0: i32) -> (i32, i32) {
    %c0_i32 = arith.constant 0 : i32
    %c0_i32_0 = arith.constant 0 : i32
    %c0_i32_1 = arith.constant 0 : i32
    return %c0_i32, %c0_i32_0 : i32, i32
  }
  func.func @transform_4(%arg0: i32) -> (i32, i32) {
    %c0_i32 = arith.constant 0 : i32
    %c0_i32_0 = arith.constant 0 : i32
    %c0_i32_1 = arith.constant 0 : i32
    return %c0_i32, %c0_i32_0 : i32, i32
  }
  func.func @transform_5(%arg0: i32) -> (i32, i32) {
    %c0_i32 = arith.constant 0 : i32
    %c0_i32_0 = arith.constant 0 : i32
    %c0_i32_1 = arith.constant 0 : i32
    return %c0_i32, %c0_i32_0 : i32, i32
  }
  func.func @transform_6(%arg0: i32) -> (i32, i32) {
    %c0_i32 = arith.constant 0 : i32
    %c0_i32_0 = arith.constant 0 : i32
    %c0_i32_1 = arith.constant 0 : i32
    return %c0_i32, %c0_i32_0 : i32, i32
  }
  func.func @transform_7(%arg0: i32) -> (i32, i32) {
    %c0_i32 = arith.constant 0 : i32
    %c0_i32_0 = arith.constant 0 : i32
    return %arg0, %c0_i32 : i32, i32
  }
}

</mosaic_0001>

<bundles_post_ra>
// kernel: policy_network_forward.1
= control target key start
LH: loop header
LB: loop body
LE: loop exit
PB: predicated region body
PF: predicated region fallthrough
CT: control target
= control target key end

     0   :  { %v911_v3 = vmov 0.0   ;;  %vm62_vm0 = vcmask 261120   ;;  %s1353_s1 = inlined_call_operand.vmem [shape: f32[32,256], index: 1, kind: input, shape index: {}]   ;;  %s1354_s0 = inlined_call_operand.vmem [shape: f32[128,32], index: 0, kind: input, shape index: {}]   ;;  %s1355_s3 = inlined_call_operand.vmem [shape: f32[256,128], index: 3, kind: input, shape index: {}]   ;;  %s1356_s5 = inlined_call_operand.vmem [shape: f32[128,128], index: 5, kind: input, shape index: {}]   ;;  %s1357_s2 = inlined_call_operand.vmem [shape: f32[1,256], index: 2, kind: input, shape index: {}]   ;;  %s1358_s4 = inlined_call_operand.vmem [shape: f32[1,128], index: 4, kind: input, shape index: {}]   ;;  %s1359_s6 = inlined_call_operand.vmem [shape: f32[1,128], index: 6, kind: input, shape index: {}]   ;;  %s1360_s7 = inlined_call_operand.vmem [shape: f32[128,128], index: 7, kind: output, shape index: {}]  }
   0x1   :  { %v49_v0 = vld [vmem:[%s1353_s1 + $0x38] sm:$0xff]  ;;  %v48_v1 = vld [vmem:[%s1353_s1 + $0x30] sm:$0xff]  ;;  %v47_v2 = vld [vmem:[%s1353_s1 + $0x28] sm:$0xff]  ;;  %175 = vmatprep.mubr.f32.mxu0 %v911_v3 }
   0x2   :  { %135 = vmatprep.subr.mxu0 %v49_v0  ;;  %v46_v4 = vld [vmem:[%s1353_s1 + $0x20] sm:$0xff]  ;;  %v45_v5 = vld [vmem:[%s1353_s1 + $0x18] sm:$0xff]  ;;  %v44_v6 = vld [vmem:[%s1353_s1 + $0x10] sm:$0xff] }
   0x3   :  { %136 = vmatpush1.msra.mxu0 %v48_v1  ;;  %v43_v7 = vld [vmem:[%s1353_s1 + $0x8] sm:$0xff]  ;;  %v42_v8 = vld [vmem:[%s1353_s1] sm:$0xff]  ;;  %v335_v10 = vld [vmem:[%s1355_s3 + $0xf8] sm:$0xff] }
   0x4   :  { %137 = vmatprep.subr.mxu0 %v47_v2  ;;  %v26_v9 = vld [vmem:[%s1354_s0] sm:$0xff]  ;;  %v319_v11 = vld [vmem:[%s1355_s3 + $0x78] sm:$0xff]  ;;  %v334_v12 = vld [vmem:[%s1355_s3 + $0xf0] sm:$0xff]  ;;  %710 = vmatprep.subr.mxu1 %v335_v10 }
   0x5   :  { %138 = vmatpush1.msra.mxu0 %v46_v4  ;;  %v318_v13 = vld [vmem:[%s1355_s3 + $0x70] sm:$0xff]  ;;  %v27_v14 = vld [vmem:[%s1354_s0 + $0x8] sm:$0xff]  ;;  %711 = vmatpush3.msra.mxu1 %v319_v11  ;;  %v332_v17 = vld [vmem:[%s1355_s3 + $0xe0] sm:$0xff] }
   0x6   :  { %139 = vmatprep.subr.mxu0 %v45_v5  ;;  %v333_v15 = vld [vmem:[%s1355_s3 + $0xe8] sm:$0xff]  ;;  %712 = vmatprep.subr.mxu1 %v334_v12  ;;  %v316_v18 = vld [vmem:[%s1355_s3 + $0x60] sm:$0xff]  ;;  %v28_v19 = vld [vmem:[%s1354_s0 + $0x10] sm:$0xff] }
   0x7   :  { %140 = vmatpush1.msra.mxu0 %v44_v6  ;;  %v317_v16 = vld [vmem:[%s1355_s3 + $0x68] sm:$0xff]  ;;  %713 = vmatpush3.msra.mxu1 %v318_v13  ;;  %v331_v20 = vld [vmem:[%s1355_s3 + $0xd8] sm:$0xff]  ;;  %v330_v22 = vld [vmem:[%s1355_s3 + $0xd0] sm:$0xff] }
   0x8   :  { %141 = vmatprep.subr.mxu0 %v43_v7  ;;  %714 = vmatprep.subr.mxu1 %v333_v15  ;;  %v315_v21 = vld [vmem:[%s1355_s3 + $0x58] sm:$0xff]  ;;  %v314_v23 = vld [vmem:[%s1355_s3 + $0x50] sm:$0xff]  ;;  %v329_v25 = vld [vmem:[%s1355_s3 + $0xc8] sm:$0xff] }
   0x9   :  { %142 = vmatpush1.msra.mxu0 %v42_v8  ;;  %715 = vmatpush3.msra.mxu1 %v317_v16  ;;  %v29_v24 = vld [vmem:[%s1354_s0 + $0x18] sm:$0xff]  ;;  %v313_v26 = vld [vmem:[%s1355_s3 + $0x48] sm:$0xff]  ;;  %v328_v27 = vld [vmem:[%s1355_s3 + $0xc0] sm:$0xff] }
   0xa   :  { %692 = vmatmul.mubr.msk.f32.vlgmr.msra.gmra.mxu0 %vm62_vm0, %v26_v9  ;;  %716 = vmatprep.subr.mxu1 %v332_v17  ;;  %v312_v28 = vld [vmem:[%s1355_s3 + $0x40] sm:$0xff]  ;;  %v327_v30 = vld [vmem:[%s1355_s3 + $0xb8] sm:$0xff]  ;;  %v326_v32 = vld [vmem:[%s1355_s3 + $0xb0] sm:$0xff] }
   0xb   :  { %181 = vmatprep.mubr.f32.mxu0 %v911_v3  ;;  %717 = vmatpush3.msra.mxu1 %v316_v18  ;;  %v30_v29 = vld [vmem:[%s1354_s0 + $0x20] sm:$0xff]  ;;  %v311_v31 = vld [vmem:[%s1355_s3 + $0x38] sm:$0xff]  ;;  %v310_v33 = vld [vmem:[%s1355_s3 + $0x30] sm:$0xff] }
   0xc   :  { %718 = vmatprep.subr.mxu1 %v331_v20  ;;  %v31_v34 = vld [vmem:[%s1354_s0 + $0x28] sm:$0xff]  ;;  %v324_v37 = vld [vmem:[%s1355_s3 + $0xa0] sm:$0xff]  ;;  %v32_v39 = vld [vmem:[%s1354_s0 + $0x30] sm:$0xff] }
   0xd   :  { %719 = vmatpush3.msra.mxu1 %v315_v21  ;;  %v325_v35 = vld [vmem:[%s1355_s3 + $0xa8] sm:$0xff]  ;;  %v308_v38 = vld [vmem:[%s1355_s3 + $0x20] sm:$0xff]  ;;  %v33_v40 = vld [vmem:[%s1354_s0 + $0x38] sm:$0xff] }
   0xe   :  { %693 = vmatmul.mubr.msk.f32.gmra.mxu0 %vm62_vm0, %v27_v14  ;;  %720 = vmatprep.subr.mxu1 %v330_v22  ;;  %v309_v36 = vld [vmem:[%s1355_s3 + $0x28] sm:$0xff]  ;;  %v34_v41 = vld [vmem:[%s1354_s0 + $0x40] sm:$0xff]  ;;  %v36_v43 = vld [vmem:[%s1354_s0 + $0x50] sm:$0xff] }
   0xf   :  { %187 = vmatprep.mubr.f32.mxu0 %v911_v3  ;;  %721 = vmatpush3.msra.mxu1 %v314_v23  ;;  %v35_v42 = vld [vmem:[%s1354_s0 + $0x48] sm:$0xff]  ;;  %v37_v44 = vld [vmem:[%s1354_s0 + $0x58] sm:$0xff]  ;;  %v38_v45 = vld [vmem:[%s1354_s0 + $0x60] sm:$0xff] }
  0x10   :  { %722 = vmatprep.subr.mxu1 %v329_v25  ;;  %v39_v46 = vld [vmem:[%s1354_s0 + $0x68] sm:$0xff]  ;;  %v40_v47 = vld [vmem:[%s1354_s0 + $0x70] sm:$0xff]  ;;  %v41_v48 = vld [vmem:[%s1354_s0 + $0x78] sm:$0xff] }
  0x11   :  { %723 = vmatpush3.msra.mxu1 %v313_v26  ;;  %v323_v49 = vld [vmem:[%s1355_s3 + $0x98] sm:$0xff]  ;;  %v322_v51 = vld [vmem:[%s1355_s3 + $0x90] sm:$0xff]  ;;  %v321_v53 = vld [vmem:[%s1355_s3 + $0x88] sm:$0xff] }
  0x12   :  { %694 = vmatmul.mubr.msk.f32.gmra.mxu0 %vm62_vm0, %v28_v19  ;;  %724 = vmatprep.subr.mxu1 %v328_v27  ;;  %v307_v50 = vld [vmem:[%s1355_s3 + $0x18] sm:$0xff]  ;;  %v306_v52 = vld [vmem:[%s1355_s3 + $0x10] sm:$0xff]  ;;  %v305_v54 = vld [vmem:[%s1355_s3 + $0x8] sm:$0xff] }
  0x13   :  { %193 = vmatprep.mubr.f32.mxu0 %v911_v3  ;;  %725 = vmatpush3.msra.mxu1 %v312_v28  ;;  %v320_v55 = vld [vmem:[%s1355_s3 + $0x80] sm:$0xff]  ;;  %v519_v57 = vld [vmem:[%s1356_s5 + $0x78] sm:$0xff]  ;;  %v518_v58 = vld [vmem:[%s1356_s5 + $0x70] sm:$0xff] }
  0x14   :  { %726 = vmatprep.subr.mxu1 %v327_v30  ;;  %v304_v56 = vld [vmem:[%s1355_s3] sm:$0xff]  ;;  %822 = vmatprep.subr.mxu0 %v519_v57  ;;  %v517_v59 = vld [vmem:[%s1356_s5 + $0x68] sm:$0xff]  ;;  %v1169_v61 = vld [vmem:[%s1356_s5 + $0x58] sm:$0xff] }
  0x15   :  { %727 = vmatpush3.msra.mxu1 %v311_v31  ;;  %823 = vmatpush3.msra.mxu0 %v519_v57  ;;  %v1164_v60 = vld [vmem:[%s1356_s5 + $0x60] sm:$0xff]  ;;  %v1176_v62 = vld [vmem:[%s1356_s5 + $0x50] sm:$0xff]  ;;  %v1183_v63 = vld [vmem:[%s1356_s5 + $0x48] sm:$0xff] }
  0x16   :  { %695 = vmatmul.mubr.msk.f32.gmra.mxu0 %vm62_vm0, %v29_v24  ;;  %728 = vmatprep.subr.mxu1 %v326_v32  ;;  %v1190_v0 = vld [vmem:[%s1356_s5 + $0x40] sm:$0xff]  ;;  %v1197_v1 = vld [vmem:[%s1356_s5 + $0x38] sm:$0xff]  ;;  %v1204_v2 = vld [vmem:[%s1356_s5 + $0x30] sm:$0xff] }
  0x17   :  { %199 = vmatprep.mubr.f32.mxu0 %v911_v3  ;;  %729 = vmatpush3.msra.mxu1 %v310_v33  ;;  %v50_v6 = vld [vmem:[%s1357_s2] sm:$0x3] }
  0x18   :  { %730 = vmatprep.subr.mxu1 %v325_v35  ;;  %824 = vmatprep.subr.mxu0 %v518_v58 }
  0x19   :  { %731 = vmatpush3.msra.mxu1 %v309_v36  ;;  %825 = vmatpush3.msra.mxu0 %v518_v58 }
  0x1a   :  { %696 = vmatmul.mubr.msk.f32.gmra.mxu0 %vm62_vm0, %v30_v29  ;;  %732 = vmatprep.subr.mxu1 %v324_v37 }
  0x1b   :  { %205 = vmatprep.mubr.f32.mxu0 %v911_v3  ;;  %733 = vmatpush3.msra.mxu1 %v308_v38 }
  0x1c   :  { %734 = vmatprep.subr.mxu1 %v323_v49  ;;  %826 = vmatprep.subr.mxu0 %v517_v59 }
  0x1d   :  { %735 = vmatpush3.msra.mxu1 %v307_v50  ;;  %827 = vmatpush3.msra.mxu0 %v517_v59 }
  0x1e   :  { %697 = vmatmul.mubr.msk.f32.gmra.mxu0 %vm62_vm0, %v31_v34  ;;  %736 = vmatprep.subr.mxu1 %v322_v51 }
  0x1f   :  { %211 = vmatprep.mubr.f32.mxu0 %v911_v3  ;;  %737 = vmatpush3.msra.mxu1 %v306_v52 }
  0x20   :  { %738 = vmatprep.subr.mxu1 %v321_v53  ;;  %828 = vmatprep.subr.mxu0 %v1164_v60 }
  0x21   :  { %739 = vmatpush3.msra.mxu1 %v305_v54  ;;  %829 = vmatpush3.msra.mxu0 %v1164_v60 }
  0x22   :  { %698 = vmatmul.mubr.msk.f32.gmra.mxu0 %vm62_vm0, %v32_v39  ;;  %740 = vmatprep.subr.mxu1 %v320_v55 }
  0x23   :  { %217 = vmatprep.mubr.f32.mxu0 %v911_v3  ;;  %741 = vmatpush3.msra.mxu1 %v304_v56 }
  0x24   :  { %878 = vmatprep.subr.mxu1 %v519_v57  ;;  %830 = vmatprep.subr.mxu0 %v1169_v61 }
  0x25   :  { %831 = vmatpush3.msra.mxu0 %v1169_v61 }
  0x26   :  { %699 = vmatmul.mubr.msk.f32.gmra.mxu0 %vm62_vm0, %v33_v40  ;;  %832 = vmatprep.subr.mxu0 %v1176_v62 }
  0x27   :  { %223 = vmatprep.mubr.f32.mxu0 %v911_v3  ;;  %833 = vmatpush3.msra.mxu0 %v1176_v62 }
  0x28   :  { %834 = vmatprep.subr.mxu0 %v1183_v63 }
  0x29   :  { %835 = vmatpush3.msra.mxu0 %v1183_v63 }
  0x2a   :  { %700 = vmatmul.mubr.msk.f32.gmra.mxu0 %vm62_vm0, %v34_v41  ;;  %836 = vmatprep.subr.mxu0 %v1190_v0 }
  0x2b   :  { %229 = vmatprep.mubr.f32.mxu0 %v911_v3  ;;  %837 = vmatpush3.msra.mxu0 %v1190_v0 }
  0x2c   :  { %838 = vmatprep.subr.mxu0 %v1197_v1 }
  0x2d   :  { %839 = vmatpush3.msra.mxu0 %v1197_v1 }
  0x2e   :  { %701 = vmatmul.mubr.msk.f32.gmra.mxu0 %vm62_vm0, %v35_v42  ;;  %840 = vmatprep.subr.mxu0 %v1204_v2 }
  0x2f   :  { %235 = vmatprep.mubr.f32.mxu0 %v911_v3  ;;  %841 = vmatpush3.msra.mxu0 %v1204_v2 }
  0x32   :  { %702 = vmatmul.mubr.msk.f32.gmra.mxu0 %vm62_vm0, %v36_v43 }
  0x33   :  { %241 = vmatprep.mubr.f32.mxu0 %v911_v3 }
  0x36   :  { %703 = vmatmul.mubr.msk.f32.gmra.mxu0 %vm62_vm0, %v37_v44 }
  0x37   :  { %247 = vmatprep.mubr.f32.mxu0 %v911_v3 }
  0x3a   :  { %704 = vmatmul.mubr.msk.f32.gmra.mxu0 %vm62_vm0, %v38_v45 }
  0x3b   :  { %253 = vmatprep.mubr.f32.mxu0 %v911_v3 }
  0x3e   :  { %705 = vmatmul.mubr.msk.f32.gmra.mxu0 %vm62_vm0, %v39_v46 }
  0x3f   :  { %259 = vmatprep.mubr.f32.mxu0 %v911_v3 }
  0x42   :  { %706 = vmatmul.mubr.msk.f32.gmra.mxu0 %vm62_vm0, %v40_v47 }
  0x43   :  { %265 = vmatprep.mubr.f32.mxu0 %v911_v3  ;;  %v52_v3 = vlaneseq }
  0x45   :  { %v53_v4 = vshrl.u32 %v52_v3, 7 }
  0x46   :  { %707 = vmatmul.mubr.msk.f32.gmra.mxu0 %vm62_vm0, %v41_v48 }
  0x47   :  { %v54_v5 = vsub.s32 0, %v53_v4  ;;  %v58_v7 = vsub.s32 1, %v53_v4 }
  0x49   :  { %v1213_v8 = vrot.slane %v50_v6, %v54_v5  ;;  %v1215_v9 = vrot.slane %v50_v6, %v58_v7 }
  0xca   :  { %v177_v10 = vpop.f32.mrf.mxu0 }
  0xcb   :  { %v178_v11 = vadd.f32 %v177_v10, %v1213_v8 }
  0xcc   :  { %v179_v12 = vpop.f32.mrf.mxu0 }
  0xcd   :  { %v180_v13 = vadd.f32 %v179_v12, %v1215_v9  ;;  %v272_v16 = vmax.f32 %v178_v11, 0.0 }
  0xce   :  { %v183_v14 = vpop.f32.mrf.mxu0 }
  0xcf   :  { %v273_v15 = vmax.f32 %v180_v13, 0.0  ;;  %v184_v17 = vadd.f32 %v183_v14, %v1213_v8 }
  0xd0   :  { %v185_v18 = vpop.f32.mrf.mxu0 }
  0xd1   :  { %v186_v19 = vadd.f32 %v185_v18, %v1215_v9  ;;  %407 = vmatprep.mubr.f32.mxu1 %v273_v15  ;;  %v274_v22 = vmax.f32 %v184_v17, 0.0 }
  0xd2   :  { %v189_v20 = vpop.f32.mrf.mxu0  ;;  %408 = vmatmul.mubr.f32.vlgmr.msra.gmra.mxu1 %v272_v16 }
  0xd3   :  { %v275_v21 = vmax.f32 %v186_v19, 0.0  ;;  %894 = vmatpush3.msra.mxu1 %v519_v57  ;;  %v190_v23 = vadd.f32 %v189_v20, %v1213_v8 }
  0xd4   :  { %v191_v24 = vpop.f32.mrf.mxu0  ;;  %879 = vmatprep.subr.mxu1 %v518_v58 }
  0xd5   :  { %v192_v25 = vadd.f32 %v191_v24, %v1215_v9  ;;  %412 = vmatprep.mubr.f32.mxu1 %v275_v21  ;;  %895 = vmatpush3.msra.mxu1 %v518_v58  ;;  %v276_v28 = vmax.f32 %v190_v23, 0.0 }
  0xd6   :  { %v195_v26 = vpop.f32.mrf.mxu0  ;;  %413 = vmatmul.mubr.f32.gmra.mxu1 %v274_v22  ;;  %880 = vmatprep.subr.mxu1 %v517_v59 }
  0xd7   :  { %v277_v27 = vmax.f32 %v192_v25, 0.0  ;;  %896 = vmatpush3.msra.mxu1 %v517_v59  ;;  %v196_v29 = vadd.f32 %v195_v26, %v1213_v8 }
  0xd8   :  { %v197_v30 = vpop.f32.mrf.mxu0  ;;  %881 = vmatprep.subr.mxu1 %v1164_v60 }
  0xd9   :  { %v198_v31 = vadd.f32 %v197_v30, %v1215_v9  ;;  %417 = vmatprep.mubr.f32.mxu1 %v277_v27  ;;  %897 = vmatpush3.msra.mxu1 %v1164_v60  ;;  %v278_v34 = vmax.f32 %v196_v29, 0.0 }
  0xda   :  { %v201_v32 = vpop.f32.mrf.mxu0  ;;  %418 = vmatmul.mubr.f32.gmra.mxu1 %v276_v28  ;;  %882 = vmatprep.subr.mxu1 %v1169_v61 }
  0xdb   :  { %v279_v33 = vmax.f32 %v198_v31, 0.0  ;;  %898 = vmatpush3.msra.mxu1 %v1169_v61  ;;  %v202_v35 = vadd.f32 %v201_v32, %v1213_v8 }
  0xdc   :  { %v203_v36 = vpop.f32.mrf.mxu0  ;;  %883 = vmatprep.subr.mxu1 %v1176_v62 }
  0xdd   :  { %v204_v37 = vadd.f32 %v203_v36, %v1215_v9  ;;  %422 = vmatprep.mubr.f32.mxu1 %v279_v33  ;;  %899 = vmatpush3.msra.mxu1 %v1176_v62  ;;  %v280_v40 = vmax.f32 %v202_v35, 0.0 }
  0xde   :  { %v207_v38 = vpop.f32.mrf.mxu0  ;;  %423 = vmatmul.mubr.f32.gmra.mxu1 %v278_v34  ;;  %884 = vmatprep.subr.mxu1 %v1183_v63 }
  0xdf   :  { %v281_v39 = vmax.f32 %v204_v37, 0.0  ;;  %900 = vmatpush3.msra.mxu1 %v1183_v63  ;;  %v208_v41 = vadd.f32 %v207_v38, %v1213_v8 }
  0xe0   :  { %v209_v42 = vpop.f32.mrf.mxu0  ;;  %885 = vmatprep.subr.mxu1 %v1190_v0 }
  0xe1   :  { %v210_v43 = vadd.f32 %v209_v42, %v1215_v9  ;;  %427 = vmatprep.mubr.f32.mxu1 %v281_v39  ;;  %901 = vmatpush3.msra.mxu1 %v1190_v0  ;;  %v282_v46 = vmax.f32 %v208_v41, 0.0 }
  0xe2   :  { %v213_v44 = vpop.f32.mrf.mxu0  ;;  %428 = vmatmul.mubr.f32.gmra.mxu1 %v280_v40  ;;  %886 = vmatprep.subr.mxu1 %v1197_v1 }
  0xe3   :  { %v283_v45 = vmax.f32 %v210_v43, 0.0  ;;  %902 = vmatpush3.msra.mxu1 %v1197_v1  ;;  %v214_v47 = vadd.f32 %v213_v44, %v1213_v8  ;;  %v509_v44 = vld [vmem:[%s1356_s5 + $0x28] sm:$0xff] }
  0xe4   :  { %v215_v48 = vpop.f32.mrf.mxu0  ;;  %887 = vmatprep.subr.mxu1 %v1204_v2  ;;  %842 = vmatprep.subr.mxu0 %v509_v44 }
  0xe5   :  { %v216_v49 = vadd.f32 %v215_v48, %v1215_v9  ;;  %432 = vmatprep.mubr.f32.mxu1 %v283_v45  ;;  %903 = vmatpush3.msra.mxu1 %v1204_v2  ;;  %v284_v52 = vmax.f32 %v214_v47, 0.0  ;;  %v506_v45 = vld [vmem:[%s1356_s5 + $0x10] sm:$0xff]  ;;  %v504_v47 = vld [vmem:[%s1356_s5] sm:$0xff] }
  0xe6   :  { %v219_v50 = vpop.f32.mrf.mxu0  ;;  %433 = vmatmul.mubr.f32.gmra.mxu1 %v282_v46  ;;  %888 = vmatprep.subr.mxu1 %v509_v44  ;;  %v505_v46 = vld [vmem:[%s1356_s5 + $0x8] sm:$0xff] }
  0xe7   :  { %v285_v51 = vmax.f32 %v216_v49, 0.0  ;;  %v220_v53 = vadd.f32 %v219_v50, %v1213_v8  ;;  %843 = vmatpush3.msra.mxu0 %v509_v44  ;;  %904 = vmatpush3.msra.mxu1 %v509_v44  ;;  %v1284_v49 = vld [vmem:[%s1358_s4] ss:$0 sm:$0xff] }
  0xe8   :  { %v221_v54 = vpop.f32.mrf.mxu0 }
  0xe9   :  { %v222_v55 = vadd.f32 %v221_v54, %v1215_v9  ;;  %437 = vmatprep.mubr.f32.mxu1 %v285_v51  ;;  %v286_v58 = vmax.f32 %v220_v53, 0.0 }
  0xea   :  { %v225_v56 = vpop.f32.mrf.mxu0  ;;  %438 = vmatmul.mubr.f32.gmra.mxu1 %v284_v52 }
  0xeb   :  { %v287_v57 = vmax.f32 %v222_v55, 0.0  ;;  %v226_v59 = vadd.f32 %v225_v56, %v1213_v8 }
  0xec   :  { %v227_v60 = vpop.f32.mrf.mxu0 }
  0xed   :  { %v228_v61 = vadd.f32 %v227_v60, %v1215_v9  ;;  %442 = vmatprep.mubr.f32.mxu1 %v287_v57  ;;  %v288_v0 = vmax.f32 %v226_v59, 0.0 }
  0xee   :  { %v231_v62 = vpop.f32.mrf.mxu0  ;;  %443 = vmatmul.mubr.f32.gmra.mxu1 %v286_v58 }
  0xef   :  { %v289_v63 = vmax.f32 %v228_v61, 0.0  ;;  %v232_v1 = vadd.f32 %v231_v62, %v1213_v8 }
  0xf0   :  { %v233_v2 = vpop.f32.mrf.mxu0 }
  0xf1   :  { %v234_v3 = vadd.f32 %v233_v2, %v1215_v9  ;;  %447 = vmatprep.mubr.f32.mxu1 %v289_v63  ;;  %v290_v6 = vmax.f32 %v232_v1, 0.0 }
  0xf2   :  { %v237_v4 = vpop.f32.mrf.mxu0  ;;  %448 = vmatmul.mubr.f32.gmra.mxu1 %v288_v0 }
  0xf3   :  { %v291_v5 = vmax.f32 %v234_v3, 0.0  ;;  %v238_v7 = vadd.f32 %v237_v4, %v1213_v8 }
  0xf4   :  { %v239_v10 = vpop.f32.mrf.mxu0 }
  0xf5   :  { %v240_v11 = vadd.f32 %v239_v10, %v1215_v9  ;;  %452 = vmatprep.mubr.f32.mxu1 %v291_v5  ;;  %v292_v14 = vmax.f32 %v238_v7, 0.0 }
  0xf6   :  { %v243_v12 = vpop.f32.mrf.mxu0  ;;  %453 = vmatmul.mubr.f32.gmra.mxu1 %v290_v6 }
  0xf7   :  { %v293_v13 = vmax.f32 %v240_v11, 0.0  ;;  %v244_v15 = vadd.f32 %v243_v12, %v1213_v8 }
  0xf8   :  { %v245_v16 = vpop.f32.mrf.mxu0 }
  0xf9   :  { %v246_v17 = vadd.f32 %v245_v16, %v1215_v9  ;;  %457 = vmatprep.mubr.f32.mxu1 %v293_v13  ;;  %v294_v20 = vmax.f32 %v244_v15, 0.0 }
  0xfa   :  { %v249_v18 = vpop.f32.mrf.mxu0  ;;  %458 = vmatmul.mubr.f32.gmra.mxu1 %v292_v14 }
  0xfb   :  { %v295_v19 = vmax.f32 %v246_v17, 0.0  ;;  %v250_v21 = vadd.f32 %v249_v18, %v1213_v8 }
  0xfc   :  { %v251_v22 = vpop.f32.mrf.mxu0 }
  0xfd   :  { %v252_v23 = vadd.f32 %v251_v22, %v1215_v9  ;;  %462 = vmatprep.mubr.f32.mxu1 %v295_v19  ;;  %v296_v26 = vmax.f32 %v250_v21, 0.0 }
  0xfe   :  { %v255_v24 = vpop.f32.mrf.mxu0  ;;  %463 = vmatmul.mubr.f32.gmra.mxu1 %v294_v20 }
  0xff   :  { %v297_v25 = vmax.f32 %v252_v23, 0.0  ;;  %v256_v27 = vadd.f32 %v255_v24, %v1213_v8 }
 0x100   :  { %v257_v28 = vpop.f32.mrf.mxu0 }
 0x101   :  { %v258_v29 = vadd.f32 %v257_v28, %v1215_v9  ;;  %467 = vmatprep.mubr.f32.mxu1 %v297_v25  ;;  %v298_v32 = vmax.f32 %v256_v27, 0.0 }
 0x102   :  { %v261_v30 = vpop.f32.mrf.mxu0  ;;  %468 = vmatmul.mubr.f32.gmra.mxu1 %v296_v26 }
 0x103   :  { %v299_v31 = vmax.f32 %v258_v29, 0.0  ;;  %v262_v33 = vadd.f32 %v261_v30, %v1213_v8 }
 0x104   :  { %v263_v34 = vpop.f32.mrf.mxu0 }
 0x105   :  { %v264_v35 = vadd.f32 %v263_v34, %v1215_v9  ;;  %472 = vmatprep.mubr.f32.mxu1 %v299_v31  ;;  %v300_v38 = vmax.f32 %v262_v33, 0.0 }
 0x106   :  { %v267_v36 = vpop.f32.mrf.mxu0  ;;  %473 = vmatmul.mubr.f32.gmra.mxu1 %v298_v32 }
 0x107   :  { %v301_v37 = vmax.f32 %v264_v35, 0.0  ;;  %v268_v39 = vadd.f32 %v267_v36, %v1213_v8  ;;  %v508_v8 = vld [vmem:[%s1356_s5 + $0x20] sm:$0xff] }
 0x108   :  { %v269_v40 = vpop.f32.mrf.mxu0  ;;  %844 = vmatprep.subr.mxu0 %v508_v8  ;;  %889 = vmatprep.subr.mxu1 %v508_v8 }
 0x109   :  { %v270_v41 = vadd.f32 %v269_v40, %v1215_v9  ;;  %477 = vmatprep.mubr.f32.mxu1 %v301_v37  ;;  %v302_v43 = vmax.f32 %v268_v39, 0.0  ;;  %845 = vmatpush3.msra.mxu0 %v508_v8  ;;  %v507_v9 = vld [vmem:[%s1356_s5 + $0x18] sm:$0xff] }
 0x10a   :  { %478 = vmatmul.mubr.f32.gmra.mxu1 %v300_v38  ;;  %846 = vmatprep.subr.mxu0 %v507_v9 }
 0x10b   :  { %v303_v42 = vmax.f32 %v270_v41, 0.0  ;;  %905 = vmatpush3.msra.mxu1 %v508_v8  ;;  %847 = vmatpush3.msra.mxu0 %v507_v9 }
 0x10c   :  { %890 = vmatprep.subr.mxu1 %v507_v9  ;;  %848 = vmatprep.subr.mxu0 %v506_v45 }
 0x10d   :  { %482 = vmatprep.mubr.f32.mxu1 %v303_v42  ;;  %906 = vmatpush3.msra.mxu1 %v507_v9 }
 0x10e   :  { %483 = vmatmul.mubr.f32.gmra.mxu1 %v302_v43  ;;  %891 = vmatprep.subr.mxu1 %v506_v45 }
 0x10f   :  { %849 = vmatpush3.msra.mxu0 %v506_v45  ;;  %907 = vmatpush3.msra.mxu1 %v506_v45 }
 0x110   :  { %850 = vmatprep.subr.mxu0 %v505_v46  ;;  %892 = vmatprep.subr.mxu1 %v505_v46 }
 0x111   :  { %851 = vmatpush3.msra.mxu0 %v505_v46  ;;  %908 = vmatpush3.msra.mxu1 %v505_v46 }
 0x112   :  { %852 = vmatprep.subr.mxu0 %v504_v47  ;;  %893 = vmatprep.subr.mxu1 %v504_v47 }
 0x113   :  { %853 = vmatpush3.msra.mxu0 %v504_v47  ;;  %909 = vmatpush3.msra.mxu1 %v504_v47 }
 0x192   :  { %v742_v48 = vpop.f32.mrf.mxu1 }
 0x194   :  { %v743_v50 = vpop.f32.mrf.mxu1 }
 0x195   :  { %v744_v51 = vadd.f32 %v743_v50, %v742_v48 }
 0x196   :  { %v745_v52 = vpop.f32.mrf.mxu1 }
 0x197   :  { %v410_v53 = vadd.f32 %v744_v51, %v1284_v49 }
 0x198   :  { %v746_v54 = vpop.f32.mrf.mxu1 }
 0x199   :  { %v488_v55 = vmax.f32 %v410_v53, 0.0  ;;  %v747_v56 = vadd.f32 %v746_v54, %v745_v52 }
 0x19a   :  { %v748_v57 = vpop.f32.mrf.mxu1 }
 0x19b   :  { %v415_v58 = vadd.f32 %v747_v56, %v1284_v49  ;;  %854 = vmatprep.mubr.f32.mxu0 %v488_v55 }
 0x19c   :  { %v749_v59 = vpop.f32.mrf.mxu1 }
 0x19d   :  { %v489_v60 = vmax.f32 %v415_v58, 0.0  ;;  %v750_v61 = vadd.f32 %v749_v59, %v748_v57 }
 0x19e   :  { %v751_v62 = vpop.f32.mrf.mxu1 }
 0x19f   :  { %v420_v63 = vadd.f32 %v750_v61, %v1284_v49  ;;  %855 = vmatmul.mubr.f32.vlgmr.msra.gmra.mxu0 %v489_v60 }
 0x1a0   :  { %v752_v0 = vpop.f32.mrf.mxu1 }
 0x1a1   :  { %v490_v1 = vmax.f32 %v420_v63, 0.0  ;;  %v753_v2 = vadd.f32 %v752_v0, %v751_v62 }
 0x1a2   :  { %v754_v3 = vpop.f32.mrf.mxu1 }
 0x1a3   :  { %v425_v4 = vadd.f32 %v753_v2, %v1284_v49  ;;  %857 = vmatprep.mubr.f32.mxu0 %v490_v1  ;;  %v709_v2 = vld [vmem:[%s1359_s6] ss:$0 sm:$0xff] }
 0x1a4   :  { %v755_v5 = vpop.f32.mrf.mxu1 }
 0x1a5   :  { %v491_v6 = vmax.f32 %v425_v4, 0.0  ;;  %v756_v7 = vadd.f32 %v755_v5, %v754_v3 }
 0x1a6   :  { %v757_v10 = vpop.f32.mrf.mxu1 }
 0x1a7   :  { %v430_v11 = vadd.f32 %v756_v7, %v1284_v49  ;;  %858 = vmatmul.mubr.f32.gmra.mxu0 %v491_v6 }
 0x1a8   :  { %v758_v12 = vpop.f32.mrf.mxu1 }
 0x1a9   :  { %v492_v13 = vmax.f32 %v430_v11, 0.0  ;;  %v759_v14 = vadd.f32 %v758_v12, %v757_v10 }
 0x1aa   :  { %v760_v15 = vpop.f32.mrf.mxu1 }
 0x1ab   :  { %v435_v16 = vadd.f32 %v759_v14, %v1284_v49  ;;  %860 = vmatprep.mubr.f32.mxu0 %v492_v13 }
 0x1ac   :  { %v761_v17 = vpop.f32.mrf.mxu1 }
 0x1ad   :  { %v493_v18 = vmax.f32 %v435_v16, 0.0  ;;  %v762_v19 = vadd.f32 %v761_v17, %v760_v15 }
 0x1ae   :  { %v763_v20 = vpop.f32.mrf.mxu1 }
 0x1af   :  { %v440_v21 = vadd.f32 %v762_v19, %v1284_v49  ;;  %861 = vmatmul.mubr.f32.gmra.mxu0 %v493_v18 }
 0x1b0   :  { %v764_v22 = vpop.f32.mrf.mxu1 }
 0x1b1   :  { %v494_v23 = vmax.f32 %v440_v21, 0.0  ;;  %v765_v24 = vadd.f32 %v764_v22, %v763_v20 }
 0x1b2   :  { %v766_v25 = vpop.f32.mrf.mxu1 }
 0x1b3   :  { %v445_v26 = vadd.f32 %v765_v24, %v1284_v49  ;;  %863 = vmatprep.mubr.f32.mxu0 %v494_v23 }
 0x1b4   :  { %v767_v27 = vpop.f32.mrf.mxu1 }
 0x1b5   :  { %v495_v28 = vmax.f32 %v445_v26, 0.0  ;;  %v768_v29 = vadd.f32 %v767_v27, %v766_v25 }
 0x1b6   :  { %v769_v30 = vpop.f32.mrf.mxu1 }
 0x1b7   :  { %v450_v31 = vadd.f32 %v768_v29, %v1284_v49  ;;  %864 = vmatmul.mubr.f32.gmra.mxu0 %v495_v28 }
 0x1b8   :  { %v770_v32 = vpop.f32.mrf.mxu1 }
 0x1b9   :  { %v496_v33 = vmax.f32 %v450_v31, 0.0  ;;  %v771_v34 = vadd.f32 %v770_v32, %v769_v30 }
 0x1ba   :  { %v772_v35 = vpop.f32.mrf.mxu1 }
 0x1bb   :  { %v455_v36 = vadd.f32 %v771_v34, %v1284_v49  ;;  %866 = vmatprep.mubr.f32.mxu0 %v496_v33 }
 0x1bc   :  { %v773_v37 = vpop.f32.mrf.mxu1 }
 0x1bd   :  { %v497_v38 = vmax.f32 %v455_v36, 0.0  ;;  %v774_v39 = vadd.f32 %v773_v37, %v772_v35 }
 0x1be   :  { %v775_v40 = vpop.f32.mrf.mxu1 }
 0x1bf   :  { %v460_v41 = vadd.f32 %v774_v39, %v1284_v49  ;;  %867 = vmatmul.mubr.f32.gmra.mxu0 %v497_v38 }
 0x1c0   :  { %v776_v42 = vpop.f32.mrf.mxu1 }
 0x1c1   :  { %v498_v43 = vmax.f32 %v460_v41, 0.0  ;;  %v777_v44 = vadd.f32 %v776_v42, %v775_v40 }
 0x1c2   :  { %v778_v8 = vpop.f32.mrf.mxu1 }
 0x1c3   :  { %v465_v9 = vadd.f32 %v777_v44, %v1284_v49  ;;  %869 = vmatprep.mubr.f32.mxu0 %v498_v43 }
 0x1c4   :  { %v779_v45 = vpop.f32.mrf.mxu1 }
 0x1c5   :  { %v499_v46 = vmax.f32 %v465_v9, 0.0  ;;  %v780_v47 = vadd.f32 %v779_v45, %v778_v8 }
 0x1c6   :  { %v781_v48 = vpop.f32.mrf.mxu1 }
 0x1c7   :  { %v470_v50 = vadd.f32 %v780_v47, %v1284_v49  ;;  %870 = vmatmul.mubr.f32.gmra.mxu0 %v499_v46 }
 0x1c8   :  { %v782_v51 = vpop.f32.mrf.mxu1 }
 0x1c9   :  { %v500_v52 = vmax.f32 %v470_v50, 0.0  ;;  %v783_v53 = vadd.f32 %v782_v51, %v781_v48 }
 0x1ca   :  { %v784_v54 = vpop.f32.mrf.mxu1 }
 0x1cb   :  { %v475_v55 = vadd.f32 %v783_v53, %v1284_v49  ;;  %872 = vmatprep.mubr.f32.mxu0 %v500_v52 }
 0x1cc   :  { %v785_v56 = vpop.f32.mrf.mxu1 }
 0x1cd   :  { %v501_v57 = vmax.f32 %v475_v55, 0.0  ;;  %v786_v58 = vadd.f32 %v785_v56, %v784_v54 }
 0x1ce   :  { %v787_v59 = vpop.f32.mrf.mxu1 }
 0x1cf   :  { %v480_v60 = vadd.f32 %v786_v58, %v1284_v49  ;;  %873 = vmatmul.mubr.f32.gmra.mxu0 %v501_v57 }
 0x1d0   :  { %v788_v61 = vpop.f32.mrf.mxu1 }
 0x1d1   :  { %v502_v62 = vmax.f32 %v480_v60, 0.0  ;;  %v789_v63 = vadd.f32 %v788_v61, %v787_v59 }
 0x1d3   :  { %v485_v0 = vadd.f32 %v789_v63, %v1284_v49  ;;  %875 = vmatprep.mubr.f32.mxu1 %v502_v62 }
 0x1d5   :  { %v503_v1 = vmax.f32 %v485_v0, 0.0 }
 0x1d7   :  { %876 = vmatmul.mubr.f32.vlgmr.msra.gmra.mxu1 %v503_v1 }
 0x25f   :  { %v856_v3 = vpop.f32.mrf.mxu0 }
 0x260   :  { %v599_v4 = vadd.f32 %v856_v3, %v709_v2 }
 0x261   :  { %v593_v5 = vpop.f32.mrf.mxu0 }
 0x262   :  { %673 = vst [vmem:[%s1360_s7 + $0x8] sm:$0xff] %v599_v4  ;;  %v594_v6 = vadd.f32 %v709_v2, %v593_v5 }
 0x264   :  { %672 = vst [vmem:[%s1360_s7] sm:$0xff] %v594_v6 }
 0x267   :  { %v859_v49 = vpop.f32.mrf.mxu0 }
 0x268   :  { %v609_v7 = vadd.f32 %v859_v49, %v709_v2 }
 0x269   :  { %v603_v10 = vpop.f32.mrf.mxu0 }
 0x26a   :  { %675 = vst [vmem:[%s1360_s7 + $0x18] sm:$0xff] %v609_v7  ;;  %v604_v11 = vadd.f32 %v709_v2, %v603_v10 }
 0x26c   :  { %674 = vst [vmem:[%s1360_s7 + $0x10] sm:$0xff] %v604_v11 }
 0x26f   :  { %v862_v12 = vpop.f32.mrf.mxu0 }
 0x270   :  { %v619_v13 = vadd.f32 %v862_v12, %v709_v2 }
 0x271   :  { %v613_v14 = vpop.f32.mrf.mxu0 }
 0x272   :  { %677 = vst [vmem:[%s1360_s7 + $0x28] sm:$0xff] %v619_v13  ;;  %v614_v15 = vadd.f32 %v709_v2, %v613_v14 }
 0x274   :  { %676 = vst [vmem:[%s1360_s7 + $0x20] sm:$0xff] %v614_v15 }
 0x277   :  { %v865_v16 = vpop.f32.mrf.mxu0 }
 0x278   :  { %v629_v17 = vadd.f32 %v865_v16, %v709_v2 }
 0x279   :  { %v623_v18 = vpop.f32.mrf.mxu0 }
 0x27a   :  { %679 = vst [vmem:[%s1360_s7 + $0x38] sm:$0xff] %v629_v17  ;;  %v624_v19 = vadd.f32 %v709_v2, %v623_v18 }
 0x27c   :  { %678 = vst [vmem:[%s1360_s7 + $0x30] sm:$0xff] %v624_v19 }
 0x27f   :  { %v868_v20 = vpop.f32.mrf.mxu0 }
 0x280   :  { %v639_v21 = vadd.f32 %v868_v20, %v709_v2 }
 0x281   :  { %v633_v22 = vpop.f32.mrf.mxu0 }
 0x282   :  { %681 = vst [vmem:[%s1360_s7 + $0x48] sm:$0xff] %v639_v21  ;;  %v634_v23 = vadd.f32 %v709_v2, %v633_v22 }
 0x284   :  { %680 = vst [vmem:[%s1360_s7 + $0x40] sm:$0xff] %v634_v23 }
 0x287   :  { %v871_v24 = vpop.f32.mrf.mxu0 }
 0x288   :  { %v649_v25 = vadd.f32 %v871_v24, %v709_v2 }
 0x289   :  { %v643_v26 = vpop.f32.mrf.mxu0 }
 0x28a   :  { %683 = vst [vmem:[%s1360_s7 + $0x58] sm:$0xff] %v649_v25  ;;  %v644_v27 = vadd.f32 %v709_v2, %v643_v26 }
 0x28c   :  { %682 = vst [vmem:[%s1360_s7 + $0x50] sm:$0xff] %v644_v27 }
 0x28f   :  { %v874_v28 = vpop.f32.mrf.mxu0 }
 0x290   :  { %v659_v29 = vadd.f32 %v874_v28, %v709_v2 }
 0x291   :  { %v653_v30 = vpop.f32.mrf.mxu0 }
 0x292   :  { %685 = vst [vmem:[%s1360_s7 + $0x68] sm:$0xff] %v659_v29  ;;  %v654_v31 = vadd.f32 %v709_v2, %v653_v30 }
 0x294   :  { %684 = vst [vmem:[%s1360_s7 + $0x60] sm:$0xff] %v654_v31 }
 0x297   :  { %v877_v32 = vpop.f32.mrf.mxu1 }
 0x298   :  { %v669_v33 = vadd.f32 %v877_v32, %v709_v2 }
 0x299   :  { %v663_v34 = vpop.f32.mrf.mxu1 }
 0x29a   :  { %687 = vst [vmem:[%s1360_s7 + $0x78] sm:$0xff] %v669_v33  ;;  %v664_v35 = vadd.f32 %v709_v2, %v663_v34 }
 0x29c   :  { %686 = vst [vmem:[%s1360_s7 + $0x70] sm:$0xff] %v664_v35 }

</bundles_post_ra>
